<compile_context>
chip_gen: v7x
topology: tpu7x:2x2x1
jax: 0.10.0
libtpu: 0.0.40
codegen_flags: <defaults>
</compile_context>

<pallas_src>
import jax
import jax.numpy as jnp
from jax.experimental import pallas as pl
from jax.experimental.pallas import tpu as pltpu

HIDDEN = 128
LANE = 128
OUT_DTYPE = jnp.bfloat16   # outputs; set to jnp.float32 if downstream needs full f32
_N_FUSED_WEIGHTS = 15      # 11 common + 4 block-diag tail
_N_PLAIN_WEIGHTS = 19      # 11 common + 8 separate tail


def _round_up(x, m):
    return ((x + m - 1) // m) * m


def _use_256_fusion():
    """Block-diagonal 256-wide tail fusion fills the v6e/v7x 256x256 MXU; on v5e
    (4x128^2 MXU) it would waste half the throughput, so keep 128-wide matmuls."""
    try:
        kind = jax.devices()[0].device_kind.lower()
    except Exception:
        return True
    return not ("v5 lite" in kind or "v5e" in kind or "v5litepod" in kind)


# ----------------------------- Pallas kernels ---------------------------------
def _make_icm_kernel(fused_tail):
    f32 = jnp.float32
    bf16 = jnp.bfloat16

    def mm(x, w_ref):
        # bf16 MXU matmul with f32 accumulation
        return jnp.dot(x.astype(bf16), w_ref[...], preferred_element_type=f32)

    def relu(v):
        return jnp.maximum(v, 0.0)

    def encoder_and_layer1(state_ref, next_state_ref, action_ref,
                           we1, be1, we2, be2, we3, be3, waf, baf, wsf, wi1_n, bi1):
        TB = state_ref.shape[0]
        # shared encoder applied once to [state; next_state] (sublane concat, no scratch)
        x = jnp.concatenate([state_ref[...], next_state_ref[...]], axis=0)
        h = relu(mm(x, we1) + be1[...])
        h = relu(mm(h, we2) + be2[...])
        lat = mm(h, we3) + be3[...]                      # [2*TB, 128] f32
        s_lat = lat[0:TB, :]
        ns_lat = lat[TB:2 * TB, :]
        # state_latent feeds both first layers: one 256-wide matmul (wf1_s | wi1_s)
        s_proj = mm(s_lat, wsf)                          # [TB, 256]
        fwd_s = s_proj[:, 0:HIDDEN]
        inv_s = s_proj[:, HIDDEN:2 * HIDDEN]
        # ForwardModel layer 1 (action encoder exactly folded into waf/baf)
        h1 = relu(mm(action_ref[...], waf) + fwd_s + baf[...])
        # InverseModel layer 1
        g1 = relu(inv_s + mm(ns_lat, wi1_n) + bi1[...])
        return ns_lat, h1, g1

    if fused_tail:
        def kernel(state_ref, next_state_ref, action_ref,
                   we1, be1, we2, be2, we3, be3,
                   waf, baf, wsf, wi1_n, bi1,
                   w2bd, b2bd, w3bd, b3bd,
                   ns_out, ns_hat_out, a_hat_out):
            A = a_hat_out.shape[1]
            ns_lat, h1, g1 = encoder_and_layer1(
                state_ref, next_state_ref, action_ref,
                we1, be1, we2, be2, we3, be3, waf, baf, wsf, wi1_n, bi1)
            # lane-concat forward/inverse activations (128-aligned -> layout free);
            # block-diagonal 256-wide tail: half the MXU pushes on v6e/v7x
            hg = jnp.concatenate([h1, g1], axis=1)       # [TB, 256]
            hg = relu(mm(hg, w2bd) + b2bd[...])
            out = mm(hg, w3bd) + b3bd[...]               # [TB, 256]
            ns_out[...] = ns_lat.astype(ns_out.dtype)
            ns_hat_out[...] = out[:, 0:HIDDEN].astype(ns_hat_out.dtype)
            a_hat_out[...] = out[:, HIDDEN:HIDDEN + A].astype(a_hat_out.dtype)
        return kernel

    def kernel(state_ref, next_state_ref, action_ref,
               we1, be1, we2, be2, we3, be3,
               waf, baf, wsf, wi1_n, bi1,
               wf2, bf2, wf3, bf3, wi2, bi2, wi3p, bi3p,
               ns_out, ns_hat_out, a_hat_out):
        A = a_hat_out.shape[1]
        ns_lat, h1, g1 = encoder_and_layer1(
            state_ref, next_state_ref, action_ref,
            we1, be1, we2, be2, we3, be3, waf, baf, wsf, wi1_n, bi1)
        h2 = relu(mm(h1, wf2) + bf2[...])
        ns_hat = mm(h2, wf3) + bf3[...]
        g2 = relu(mm(g1, wi2) + bi2[...])
        a_hat = mm(g2, wi3p) + bi3p[...]                 # lane-dense matmul
        ns_out[...] = ns_lat.astype(ns_out.dtype)
        ns_hat_out[...] = ns_hat.astype(ns_hat_out.dtype)
        a_hat_out[...] = a_hat[:, 0:A].astype(a_hat_out.dtype)
    return kernel


# ----------------------------- one-time param preprocessing --------------------
def prepare_params(p, fused_tail=None):
    """Fold/fuse/pad raw (PyTorch-layout, pre-transposed) params; weights -> bf16.
    Call ONCE outside the jitted forward; pass the returned tuple to mlp_icm_forward."""
    if fused_tail is None:
        fused_tail = _use_256_fusion()
    f32 = jnp.float32
    bf16 = jnp.bfloat16
    A = p["wi3"].shape[1]
    a_pad = LANE - A

    def bd(a, b):  # block-diagonal [[a, 0], [0, b]]
        za = jnp.zeros((a.shape[0], b.shape[1]), f32)
        zb = jnp.zeros((b.shape[0], a.shape[1]), f32)
        return jnp.concatenate(
            [jnp.concatenate([a, za], axis=1),
             jnp.concatenate([zb, b], axis=1)], axis=0)

    # fold the action encoder into the forward model's first layer (exact: linear-linear)
    waf = p["wa"] @ p["wf1_a"]                                   # (A, 128)
    baf = p["ba"] @ p["wf1_a"] + p["bf1"]                        # (1, 128)
    # fuse the two weights consuming state_latent along N
    wsf = jnp.concatenate([p["wf1_s"], p["wi1_s"]], axis=1)      # (128, 256)
    # lane-dense padded action head (output is sliced back to A in the kernel store)
    wi3p = jnp.pad(p["wi3"], ((0, 0), (0, a_pad)))               # (128, 128)
    bi3p = jnp.pad(p["bi3"], ((0, 0), (0, a_pad)))               # (1, 128)

    w = lambda v: v.astype(bf16)
    common = [
        w(p["we1"]), p["be1"], w(p["we2"]), p["be2"], w(p["we3"]), p["be3"],
        w(waf), baf, w(wsf), w(p["wi1_n"]), p["bi1"],
    ]
    if fused_tail:
        w2bd = bd(p["wf2"], p["wi2"])                            # (256, 256)
        b2bd = jnp.concatenate([p["bf2"], p["bi2"]], axis=1)     # (1, 256)
        w3bd = bd(p["wf3"], wi3p)                                # (256, 256)
        b3bd = jnp.concatenate([p["bf3"], bi3p], axis=1)         # (1, 256)
        tail = [w(w2bd), b2bd, w(w3bd), b3bd]
    else:
        tail = [w(p["wf2"]), p["bf2"], w(p["wf3"]), p["bf3"],
                w(p["wi2"]), p["bi2"], w(wi3p), bi3p]
    return tuple(common + tail)


# ----------------------------- tiling -------------------------------------------
def _choose_tile(B, S):
    # >= 2 grid steps whenever the batch permits (v7x's two TensorCores), multiple of
    # 16 (bf16 sublane packing), capped at 512 rows, S-aware VMEM guard: double-
    # buffered bf16 state+next_state tiles under ~4 MiB (well inside v5e's 16 MiB
    # default scoped VMEM and v7x's 32/64 MiB).
    tb = min(512, _round_up(max(1, (B + 1) // 2), 16))
    cap = max(16, ((4 << 20) // (8 * max(S, 1))) // 16 * 16)
    return max(16, min(tb, cap))


# ----------------------------- wrapper ------------------------------------------
@jax.jit
def mlp_icm_forward(state, next_state, action, prepped):
    B, S = state.shape
    A = action.shape[1]
    fused = len(prepped) == _N_FUSED_WEIGHTS
    kernel = _make_icm_kernel(fused)

    bf16 = jnp.bfloat16
    state = state.astype(bf16)
    next_state = next_state.astype(bf16)
    action = action.astype(bf16)

    TB = _choose_tile(B, S)
    B_pad = _round_up(B, TB)
    if B_pad != B:
        pad = ((0, B_pad - B), (0, 0))
        state = jnp.pad(state, pad)
        next_state = jnp.pad(next_state, pad)
        action = jnp.pad(action, pad)
    nb = B_pad // TB

    def data_spec(feat):
        return pl.BlockSpec((TB, feat), lambda i: (i, 0))

    # weights: full-array blocks, constant index maps -> VMEM-resident across steps
    w_specs = [pl.BlockSpec(v.shape, lambda i: (0, 0)) for v in prepped]

    grid_spec = pltpu.PrefetchScalarGridSpec(
        num_scalar_prefetch=0,
        grid=(nb,),
        in_specs=[data_spec(S), data_spec(S), data_spec(A)] + w_specs,
        out_specs=(
            pl.BlockSpec((TB, HIDDEN), lambda i: (i, 0)),
            pl.BlockSpec((TB, HIDDEN), lambda i: (i, 0)),
            pl.BlockSpec((TB, A), lambda i: (i, 0)),
        ),
    )

    out_shapes = (
        jax.ShapeDtypeStruct((B_pad, HIDDEN), OUT_DTYPE),   # next_state (encoded)
        jax.ShapeDtypeStruct((B_pad, HIDDEN), OUT_DTYPE),   # next_state_hat
        jax.ShapeDtypeStruct((B_pad, A), OUT_DTYPE),        # action_hat (unpadded)
    )

    ns, ns_hat, a_hat = pl.pallas_call(
        kernel,
        out_shape=out_shapes,
        grid_spec=grid_spec,
        compiler_params=pltpu.CompilerParams(
            dimension_semantics=("parallel",)),  # shard batch tiles across v7x's 2 TCs
    )(state, next_state, action, *prepped)

    return ns[:B], ns_hat[:B], a_hat[:B]


# ----------------------------- param init ----------------------------------------
def init_params(key, state_dim, action_dim, hidden=128):
    ks = jax.random.split(key, 24)

    def w(k, shape, fan_in):
        # ~ nn.Linear default: U(-1/sqrt(fan_in), 1/sqrt(fan_in))
        bound = 1.0 / jnp.sqrt(jnp.float32(fan_in))
        return jax.random.uniform(k, shape, jnp.float32, -bound, bound)

    p = {}
    # encoder
    p["we1"] = w(ks[0], (state_dim, hidden), state_dim); p["be1"] = w(ks[1], (1, hidden), state_dim)
    p["we2"] = w(ks[2], (hidden, hidden), hidden);        p["be2"] = w(ks[3], (1, hidden), hidden)
    p["we3"] = w(ks[4], (hidden, hidden), hidden);        p["be3"] = w(ks[5], (1, hidden), hidden)
    # forward model: action encoder + hidden (Linear(256,128) split into action/state halves)
    p["wa"] = w(ks[6], (action_dim, hidden), action_dim); p["ba"] = w(ks[7], (1, hidden), action_dim)
    p["wf1_a"] = w(ks[8], (hidden, hidden), 2 * hidden)
    p["wf1_s"] = w(ks[9], (hidden, hidden), 2 * hidden)
    p["bf1"] = w(ks[10], (1, hidden), 2 * hidden)
    p["wf2"] = w(ks[11], (hidden, hidden), hidden);       p["bf2"] = w(ks[12], (1, hidden), hidden)
    p["wf3"] = w(ks[13], (hidden, hidden), hidden);       p["bf3"] = w(ks[14], (1, hidden), hidden)
    # inverse model: Linear(256,128) split into state/next_state halves
    p["wi1_s"] = w(ks[15], (hidden, hidden), 2 * hidden)
    p["wi1_n"] = w(ks[16], (hidden, hidden), 2 * hidden)
    p["bi1"] = w(ks[17], (1, hidden), 2 * hidden)
    p["wi2"] = w(ks[18], (hidden, hidden), hidden);       p["bi2"] = w(ks[19], (1, hidden), hidden)
    p["wi3"] = w(ks[20], (hidden, action_dim), hidden);   p["bi3"] = w(ks[21], (1, action_dim), hidden)
    return p


# ----------------------------- pure-JAX reference (f32, unfused) ------------------
def reference_forward(state, next_state, action, p):
    def lin(x, w, b):
        return x @ w + b

    def enc(x):
        h = jnp.maximum(lin(x, p["we1"], p["be1"]), 0.0)
        h = jnp.maximum(lin(h, p["we2"], p["be2"]), 0.0)
        return lin(h, p["we3"], p["be3"])

    s = enc(state)
    ns = enc(next_state)
    a_lat = lin(action, p["wa"], p["ba"])
    x = jnp.concatenate([a_lat, s], axis=-1)
    wf1 = jnp.concatenate([p["wf1_a"], p["wf1_s"]], axis=0)
    h = jnp.maximum(x @ wf1 + p["bf1"], 0.0)
    h = jnp.maximum(lin(h, p["wf2"], p["bf2"]), 0.0)
    ns_hat = lin(h, p["wf3"], p["bf3"])
    y = jnp.concatenate([s, ns], axis=-1)
    wi1 = jnp.concatenate([p["wi1_s"], p["wi1_n"]], axis=0)
    g = jnp.maximum(y @ wi1 + p["bi1"], 0.0)
    g = jnp.maximum(lin(g, p["wi2"], p["bi2"]), 0.0)
    a_hat = lin(g, p["wi3"], p["bi3"])
    return ns, ns_hat, a_hat


# ----------------------------- main -----------------------------------------------
if __name__ == "__main__":
    B, STATE_DIM, ACTION_DIM = 8, 16, 4

    key = jax.random.PRNGKey(0)
    k_s, k_ns, k_a, k_p = jax.random.split(key, 4)
    state = jax.random.normal(k_s, (B, STATE_DIM), jnp.float32)
    next_state = jax.random.normal(k_ns, (B, STATE_DIM), jnp.float32)
    action = jax.random.normal(k_a, (B, ACTION_DIM), jnp.float32)  # continuous actions
    params = init_params(k_p, STATE_DIM, ACTION_DIM)

    # one-time param prep (folding/fusion/padding/bf16) outside the jitted forward
    prepped = prepare_params(params, fused_tail=_use_256_fusion())

    outs = mlp_icm_forward(state, next_state, action, prepped)
    outs = jax.block_until_ready(outs)

    refs = reference_forward(state, next_state, action, params)
    # bf16 weights + bf16 activation/output streams vs f32 reference -> loosened tol
    for o, r in zip(outs, refs):
        assert o.shape == r.shape, (o.shape, r.shape)
        assert jnp.allclose(o.astype(jnp.float32), r, atol=5e-2, rtol=1e-1)

    print("KERNEL_OK")
</pallas_src>

<mosaic_0001>
module attributes {stable_mosaic.version = 11 : i64} {
  func.func @kernel(%arg0: i32, %arg1: memref<16x16xbf16, #tpu.memory_space<vmem>>, %arg2: memref<16x16xbf16, #tpu.memory_space<vmem>>, %arg3: memref<16x4xbf16, #tpu.memory_space<vmem>>, %arg4: memref<16x128xbf16, #tpu.memory_space<vmem>>, %arg5: memref<1x128xf32, #tpu.memory_space<vmem>>, %arg6: memref<128x128xbf16, #tpu.memory_space<vmem>>, %arg7: memref<1x128xf32, #tpu.memory_space<vmem>>, %arg8: memref<128x128xbf16, #tpu.memory_space<vmem>>, %arg9: memref<1x128xf32, #tpu.memory_space<vmem>>, %arg10: memref<4x128xbf16, #tpu.memory_space<vmem>>, %arg11: memref<1x128xf32, #tpu.memory_space<vmem>>, %arg12: memref<128x256xbf16, #tpu.memory_space<vmem>>, %arg13: memref<128x128xbf16, #tpu.memory_space<vmem>>, %arg14: memref<1x128xf32, #tpu.memory_space<vmem>>, %arg15: memref<256x256xbf16, #tpu.memory_space<vmem>>, %arg16: memref<1x256xf32, #tpu.memory_space<vmem>>, %arg17: memref<256x256xbf16, #tpu.memory_space<vmem>>, %arg18: memref<1x256xf32, #tpu.memory_space<vmem>>, %arg19: memref<16x128xbf16, #tpu.memory_space<vmem>>, %arg20: memref<16x128xbf16, #tpu.memory_space<vmem>>, %arg21: memref<16x4xbf16, #tpu.memory_space<vmem>>) attributes {dimension_semantics = [#tpu.dimension_semantics<parallel>], iteration_bounds = array<i64: 1>, scalar_prefetch = 0 : i64, scratch_operands = 0 : i64, tpu.core_type = #tpu.core_type<tc>, window_params = [{transform_indices = @transform_0, window_bounds = array<i64: 16, 16>}, {transform_indices = @transform_1, window_bounds = array<i64: 16, 16>}, {transform_indices = @transform_2, window_bounds = array<i64: 16, 4>}, {pipeline_mode = #tpu.pipeline_mode<synchronous>, transform_indices = @transform_3, window_bounds = array<i64: 16, 128>}, {pipeline_mode = #tpu.pipeline_mode<synchronous>, transform_indices = @transform_4, window_bounds = array<i64: 1, 128>}, {pipeline_mode = #tpu.pipeline_mode<synchronous>, transform_indices = @transform_5, window_bounds = array<i64: 128, 128>}, {pipeline_mode = #tpu.pipeline_mode<synchronous>, transform_indices = @transform_6, window_bounds = array<i64: 1, 128>}, {pipeline_mode = #tpu.pipeline_mode<synchronous>, transform_indices = @transform_7, window_bounds = array<i64: 128, 128>}, {pipeline_mode = #tpu.pipeline_mode<synchronous>, transform_indices = @transform_8, window_bounds = array<i64: 1, 128>}, {pipeline_mode = #tpu.pipeline_mode<synchronous>, transform_indices = @transform_9, window_bounds = array<i64: 4, 128>}, {pipeline_mode = #tpu.pipeline_mode<synchronous>, transform_indices = @transform_10, window_bounds = array<i64: 1, 128>}, {pipeline_mode = #tpu.pipeline_mode<synchronous>, transform_indices = @transform_11, window_bounds = array<i64: 128, 256>}, {pipeline_mode = #tpu.pipeline_mode<synchronous>, transform_indices = @transform_12, window_bounds = array<i64: 128, 128>}, {pipeline_mode = #tpu.pipeline_mode<synchronous>, transform_indices = @transform_13, window_bounds = array<i64: 1, 128>}, {pipeline_mode = #tpu.pipeline_mode<synchronous>, transform_indices = @transform_14, window_bounds = array<i64: 256, 256>}, {pipeline_mode = #tpu.pipeline_mode<synchronous>, transform_indices = @transform_15, window_bounds = array<i64: 1, 256>}, {pipeline_mode = #tpu.pipeline_mode<synchronous>, transform_indices = @transform_16, window_bounds = array<i64: 256, 256>}, {pipeline_mode = #tpu.pipeline_mode<synchronous>, transform_indices = @transform_17, window_bounds = array<i64: 1, 256>}, {transform_indices = @transform_18, window_bounds = array<i64: 16, 128>}, {transform_indices = @transform_19, window_bounds = array<i64: 16, 128>}, {transform_indices = @transform_20, window_bounds = array<i64: 16, 4>}]} {
    %c0 = arith.constant 0 : index
    %c0_0 = arith.constant 0 : index
    %0 = vector.load %arg1[%c0, %c0_0] : memref<16x16xbf16, #tpu.memory_space<vmem>>, vector<16x16xbf16>
    %c0_1 = arith.constant 0 : index
    %c0_2 = arith.constant 0 : index
    %1 = vector.load %arg2[%c0_1, %c0_2] : memref<16x16xbf16, #tpu.memory_space<vmem>>, vector<16x16xbf16>
    %2 = tpu.concatenate %0, %1 in 0 : vector<16x16xbf16>, vector<16x16xbf16> -> vector<32x16xbf16>
    %c0_3 = arith.constant 0 : index
    %c0_4 = arith.constant 0 : index
    %3 = vector.load %arg4[%c0_3, %c0_4] : memref<16x128xbf16, #tpu.memory_space<vmem>>, vector<16x128xbf16>
    %cst = arith.constant dense<0.000000e+00> : vector<32x128xf32>
    %4 = tpu.matmul %2, %3, %cst {dimension_numbers = #tpu.dot_dimension_numbers<[1], [0], [0], [1], [0, 0, 1, 1], [], []>} : vector<32x16xbf16>, vector<16x128xbf16>, vector<32x128xf32> -> vector<32x128xf32>
    %c0_5 = arith.constant 0 : index
    %c0_6 = arith.constant 0 : index
    %5 = vector.load %arg5[%c0_5, %c0_6] : memref<1x128xf32, #tpu.memory_space<vmem>>, vector<1x128xf32>
    %6 = vector.broadcast %5 : vector<1x128xf32> to vector<32x128xf32>
    %7 = arith.addf %4, %6 : vector<32x128xf32>
    %cst_7 = arith.constant 0.000000e+00 : f32
    %8 = vector.broadcast %cst_7 : f32 to vector<32x128xf32>
    %9 = arith.maximumf %7, %8 : vector<32x128xf32>
    %10 = arith.truncf %9 : vector<32x128xf32> to vector<32x128xbf16>
    %c0_8 = arith.constant 0 : index
    %c0_9 = arith.constant 0 : index
    %11 = vector.load %arg6[%c0_8, %c0_9] : memref<128x128xbf16, #tpu.memory_space<vmem>>, vector<128x128xbf16>
    %cst_10 = arith.constant dense<0.000000e+00> : vector<32x128xf32>
    %12 = tpu.matmul %10, %11, %cst_10 {dimension_numbers = #tpu.dot_dimension_numbers<[1], [0], [0], [1], [0, 0, 1, 1], [], []>} : vector<32x128xbf16>, vector<128x128xbf16>, vector<32x128xf32> -> vector<32x128xf32>
    %c0_11 = arith.constant 0 : index
    %c0_12 = arith.constant 0 : index
    %13 = vector.load %arg7[%c0_11, %c0_12] : memref<1x128xf32, #tpu.memory_space<vmem>>, vector<1x128xf32>
    %14 = vector.broadcast %13 : vector<1x128xf32> to vector<32x128xf32>
    %15 = arith.addf %12, %14 : vector<32x128xf32>
    %cst_13 = arith.constant 0.000000e+00 : f32
    %16 = vector.broadcast %cst_13 : f32 to vector<32x128xf32>
    %17 = arith.maximumf %15, %16 : vector<32x128xf32>
    %18 = arith.truncf %17 : vector<32x128xf32> to vector<32x128xbf16>
    %c0_14 = arith.constant 0 : index
    %c0_15 = arith.constant 0 : index
    %19 = vector.load %arg8[%c0_14, %c0_15] : memref<128x128xbf16, #tpu.memory_space<vmem>>, vector<128x128xbf16>
    %cst_16 = arith.constant dense<0.000000e+00> : vector<32x128xf32>
    %20 = tpu.matmul %18, %19, %cst_16 {dimension_numbers = #tpu.dot_dimension_numbers<[1], [0], [0], [1], [0, 0, 1, 1], [], []>} : vector<32x128xbf16>, vector<128x128xbf16>, vector<32x128xf32> -> vector<32x128xf32>
    %c0_17 = arith.constant 0 : index
    %c0_18 = arith.constant 0 : index
    %21 = vector.load %arg9[%c0_17, %c0_18] : memref<1x128xf32, #tpu.memory_space<vmem>>, vector<1x128xf32>
    %22 = vector.broadcast %21 : vector<1x128xf32> to vector<32x128xf32>
    %23 = arith.addf %20, %22 : vector<32x128xf32>
    %24 = vector.extract_strided_slice %23 {offsets = [0, 0], sizes = [16, 128], strides = [1, 1]} : vector<32x128xf32> to vector<16x128xf32>
    %25 = vector.extract_strided_slice %23 {offsets = [16, 0], sizes = [16, 128], strides = [1, 1]} : vector<32x128xf32> to vector<16x128xf32>
    %26 = arith.truncf %24 : vector<16x128xf32> to vector<16x128xbf16>
    %c0_19 = arith.constant 0 : index
    %c0_20 = arith.constant 0 : index
    %27 = vector.load %arg12[%c0_19, %c0_20] : memref<128x256xbf16, #tpu.memory_space<vmem>>, vector<128x256xbf16>
    %cst_21 = arith.constant dense<0.000000e+00> : vector<16x256xf32>
    %28 = tpu.matmul %26, %27, %cst_21 {dimension_numbers = #tpu.dot_dimension_numbers<[1], [0], [0], [1], [0, 0, 1, 1], [], []>} : vector<16x128xbf16>, vector<128x256xbf16>, vector<16x256xf32> -> vector<16x256xf32>
    %29 = vector.extract_strided_slice %28 {offsets = [0, 0], sizes = [16, 128], strides = [1, 1]} : vector<16x256xf32> to vector<16x128xf32>
    %30 = vector.extract_strided_slice %28 {offsets = [0, 128], sizes = [16, 128], strides = [1, 1]} : vector<16x256xf32> to vector<16x128xf32>
    %c0_22 = arith.constant 0 : index
    %c0_23 = arith.constant 0 : index
    %31 = vector.load %arg3[%c0_22, %c0_23] : memref<16x4xbf16, #tpu.memory_space<vmem>>, vector<16x4xbf16>
    %c0_24 = arith.constant 0 : index
    %c0_25 = arith.constant 0 : index
    %32 = vector.load %arg10[%c0_24, %c0_25] : memref<4x128xbf16, #tpu.memory_space<vmem>>, vector<4x128xbf16>
    %cst_26 = arith.constant dense<0.000000e+00> : vector<16x128xf32>
    %33 = tpu.matmul %31, %32, %cst_26 {dimension_numbers = #tpu.dot_dimension_numbers<[1], [0], [0], [1], [0, 0, 1, 1], [], []>} : vector<16x4xbf16>, vector<4x128xbf16>, vector<16x128xf32> -> vector<16x128xf32>
    %34 = arith.addf %33, %29 : vector<16x128xf32>
    %c0_27 = arith.constant 0 : index
    %c0_28 = arith.constant 0 : index
    %35 = vector.load %arg11[%c0_27, %c0_28] : memref<1x128xf32, #tpu.memory_space<vmem>>, vector<1x128xf32>
    %36 = vector.broadcast %35 : vector<1x128xf32> to vector<16x128xf32>
    %37 = arith.addf %34, %36 : vector<16x128xf32>
    %cst_29 = arith.constant 0.000000e+00 : f32
    %38 = vector.broadcast %cst_29 : f32 to vector<16x128xf32>
    %39 = arith.maximumf %37, %38 : vector<16x128xf32>
    %40 = arith.truncf %25 : vector<16x128xf32> to vector<16x128xbf16>
    %c0_30 = arith.constant 0 : index
    %c0_31 = arith.constant 0 : index
    %41 = vector.load %arg13[%c0_30, %c0_31] : memref<128x128xbf16, #tpu.memory_space<vmem>>, vector<128x128xbf16>
    %cst_32 = arith.constant dense<0.000000e+00> : vector<16x128xf32>
    %42 = tpu.matmul %40, %41, %cst_32 {dimension_numbers = #tpu.dot_dimension_numbers<[1], [0], [0], [1], [0, 0, 1, 1], [], []>} : vector<16x128xbf16>, vector<128x128xbf16>, vector<16x128xf32> -> vector<16x128xf32>
    %43 = arith.addf %30, %42 : vector<16x128xf32>
    %c0_33 = arith.constant 0 : index
    %c0_34 = arith.constant 0 : index
    %44 = vector.load %arg14[%c0_33, %c0_34] : memref<1x128xf32, #tpu.memory_space<vmem>>, vector<1x128xf32>
    %45 = vector.broadcast %44 : vector<1x128xf32> to vector<16x128xf32>
    %46 = arith.addf %43, %45 : vector<16x128xf32>
    %cst_35 = arith.constant 0.000000e+00 : f32
    %47 = vector.broadcast %cst_35 : f32 to vector<16x128xf32>
    %48 = arith.maximumf %46, %47 : vector<16x128xf32>
    %49 = tpu.concatenate %39, %48 in 1 : vector<16x128xf32>, vector<16x128xf32> -> vector<16x256xf32>
    %50 = arith.truncf %49 : vector<16x256xf32> to vector<16x256xbf16>
    %c0_36 = arith.constant 0 : index
    %c0_37 = arith.constant 0 : index
    %51 = vector.load %arg15[%c0_36, %c0_37] : memref<256x256xbf16, #tpu.memory_space<vmem>>, vector<256x256xbf16>
    %cst_38 = arith.constant dense<0.000000e+00> : vector<16x256xf32>
    %52 = tpu.matmul %50, %51, %cst_38 {dimension_numbers = #tpu.dot_dimension_numbers<[1], [0], [0], [1], [0, 0, 1, 1], [], []>} : vector<16x256xbf16>, vector<256x256xbf16>, vector<16x256xf32> -> vector<16x256xf32>
    %c0_39 = arith.constant 0 : index
    %c0_40 = arith.constant 0 : index
    %53 = vector.load %arg16[%c0_39, %c0_40] : memref<1x256xf32, #tpu.memory_space<vmem>>, vector<1x256xf32>
    %54 = vector.broadcast %53 : vector<1x256xf32> to vector<16x256xf32>
    %55 = arith.addf %52, %54 : vector<16x256xf32>
    %cst_41 = arith.constant 0.000000e+00 : f32
    %56 = vector.broadcast %cst_41 : f32 to vector<16x256xf32>
    %57 = arith.maximumf %55, %56 : vector<16x256xf32>
    %58 = arith.truncf %57 : vector<16x256xf32> to vector<16x256xbf16>
    %c0_42 = arith.constant 0 : index
    %c0_43 = arith.constant 0 : index
    %59 = vector.load %arg17[%c0_42, %c0_43] : memref<256x256xbf16, #tpu.memory_space<vmem>>, vector<256x256xbf16>
    %cst_44 = arith.constant dense<0.000000e+00> : vector<16x256xf32>
    %60 = tpu.matmul %58, %59, %cst_44 {dimension_numbers = #tpu.dot_dimension_numbers<[1], [0], [0], [1], [0, 0, 1, 1], [], []>} : vector<16x256xbf16>, vector<256x256xbf16>, vector<16x256xf32> -> vector<16x256xf32>
    %c0_45 = arith.constant 0 : index
    %c0_46 = arith.constant 0 : index
    %61 = vector.load %arg18[%c0_45, %c0_46] : memref<1x256xf32, #tpu.memory_space<vmem>>, vector<1x256xf32>
    %62 = vector.broadcast %61 : vector<1x256xf32> to vector<16x256xf32>
    %63 = arith.addf %60, %62 : vector<16x256xf32>
    %64 = arith.truncf %25 : vector<16x128xf32> to vector<16x128xbf16>
    %c0_47 = arith.constant 0 : index
    %c0_48 = arith.constant 0 : index
    %65 = vector.load %arg19[%c0_47, %c0_48] : memref<16x128xbf16, #tpu.memory_space<vmem>>, vector<16x128xbf16>
    tpu.vector_store %arg19[%c0_47, %c0_48], %64 {strides = array<i32>} : memref<16x128xbf16, #tpu.memory_space<vmem>>, vector<16x128xbf16>,
    %66 = vector.extract_strided_slice %63 {offsets = [0, 0], sizes = [16, 128], strides = [1, 1]} : vector<16x256xf32> to vector<16x128xf32>
    %67 = arith.truncf %66 : vector<16x128xf32> to vector<16x128xbf16>
    %c0_49 = arith.constant 0 : index
    %c0_50 = arith.constant 0 : index
    %68 = vector.load %arg20[%c0_49, %c0_50] : memref<16x128xbf16, #tpu.memory_space<vmem>>, vector<16x128xbf16>
    tpu.vector_store %arg20[%c0_49, %c0_50], %67 {strides = array<i32>} : memref<16x128xbf16, #tpu.memory_space<vmem>>, vector<16x128xbf16>,
    %69 = vector.extract_strided_slice %63 {offsets = [0, 128], sizes = [16, 4], strides = [1, 1]} : vector<16x256xf32> to vector<16x4xf32>
    %70 = arith.truncf %69 : vector<16x4xf32> to vector<16x4xbf16>
    %c0_51 = arith.constant 0 : index
    %c0_52 = arith.constant 0 : index
    %71 = vector.load %arg21[%c0_51, %c0_52] : memref<16x4xbf16, #tpu.memory_space<vmem>>, vector<16x4xbf16>
    tpu.vector_store %arg21[%c0_51, %c0_52], %70 {strides = array<i32>} : memref<16x4xbf16, #tpu.memory_space<vmem>>, vector<16x4xbf16>,
    return
  }
  func.func @transform_0(%arg0: i32) -> (i32, i32) {
    %c0_i32 = arith.constant 0 : i32
    %c0_i32_0 = arith.constant 0 : i32
    return %arg0, %c0_i32 : i32, i32
  }
  func.func @transform_1(%arg0: i32) -> (i32, i32) {
    %c0_i32 = arith.constant 0 : i32
    %c0_i32_0 = arith.constant 0 : i32
    return %arg0, %c0_i32 : i32, i32
  }
  func.func @transform_2(%arg0: i32) -> (i32, i32) {
    %c0_i32 = arith.constant 0 : i32
    %c0_i32_0 = arith.constant 0 : i32
    return %arg0, %c0_i32 : i32, i32
  }
  func.func @transform_3(%arg0: i32) -> (i32, i32) {
    %c0_i32 = arith.constant 0 : i32
    %c0_i32_0 = arith.constant 0 : i32
    %c0_i32_1 = arith.constant 0 : i32
    return %c0_i32, %c0_i32_0 : i32, i32
  }
  func.func @transform_4(%arg0: i32) -> (i32, i32) {
    %c0_i32 = arith.constant 0 : i32
    %c0_i32_0 = arith.constant 0 : i32
    %c0_i32_1 = arith.constant 0 : i32
    return %c0_i32, %c0_i32_0 : i32, i32
  }
  func.func @transform_5(%arg0: i32) -> (i32, i32) {
    %c0_i32 = arith.constant 0 : i32
    %c0_i32_0 = arith.constant 0 : i32
    %c0_i32_1 = arith.constant 0 : i32
    return %c0_i32, %c0_i32_0 : i32, i32
  }
  func.func @transform_6(%arg0: i32) -> (i32, i32) {
    %c0_i32 = arith.constant 0 : i32
    %c0_i32_0 = arith.constant 0 : i32
    %c0_i32_1 = arith.constant 0 : i32
    return %c0_i32, %c0_i32_0 : i32, i32
  }
  func.func @transform_7(%arg0: i32) -> (i32, i32) {
    %c0_i32 = arith.constant 0 : i32
    %c0_i32_0 = arith.constant 0 : i32
    %c0_i32_1 = arith.constant 0 : i32
    return %c0_i32, %c0_i32_0 : i32, i32
  }
  func.func @transform_8(%arg0: i32) -> (i32, i32) {
    %c0_i32 = arith.constant 0 : i32
    %c0_i32_0 = arith.constant 0 : i32
    %c0_i32_1 = arith.constant 0 : i32
    return %c0_i32, %c0_i32_0 : i32, i32
  }
  func.func @transform_9(%arg0: i32) -> (i32, i32) {
    %c0_i32 = arith.constant 0 : i32
    %c0_i32_0 = arith.constant 0 : i32
    %c0_i32_1 = arith.constant 0 : i32
    return %c0_i32, %c0_i32_0 : i32, i32
  }
  func.func @transform_10(%arg0: i32) -> (i32, i32) {
    %c0_i32 = arith.constant 0 : i32
    %c0_i32_0 = arith.constant 0 : i32
    %c0_i32_1 = arith.constant 0 : i32
    return %c0_i32, %c0_i32_0 : i32, i32
  }
  func.func @transform_11(%arg0: i32) -> (i32, i32) {
    %c0_i32 = arith.constant 0 : i32
    %c0_i32_0 = arith.constant 0 : i32
    %c0_i32_1 = arith.constant 0 : i32
    return %c0_i32, %c0_i32_0 : i32, i32
  }
  func.func @transform_12(%arg0: i32) -> (i32, i32) {
    %c0_i32 = arith.constant 0 : i32
    %c0_i32_0 = arith.constant 0 : i32
    %c0_i32_1 = arith.constant 0 : i32
    return %c0_i32, %c0_i32_0 : i32, i32
  }
  func.func @transform_13(%arg0: i32) -> (i32, i32) {
    %c0_i32 = arith.constant 0 : i32
    %c0_i32_0 = arith.constant 0 : i32
    %c0_i32_1 = arith.constant 0 : i32
    return %c0_i32, %c0_i32_0 : i32, i32
  }
  func.func @transform_14(%arg0: i32) -> (i32, i32) {
    %c0_i32 = arith.constant 0 : i32
    %c0_i32_0 = arith.constant 0 : i32
    %c0_i32_1 = arith.constant 0 : i32
    return %c0_i32, %c0_i32_0 : i32, i32
  }
  func.func @transform_15(%arg0: i32) -> (i32, i32) {
    %c0_i32 = arith.constant 0 : i32
    %c0_i32_0 = arith.constant 0 : i32
    %c0_i32_1 = arith.constant 0 : i32
    return %c0_i32, %c0_i32_0 : i32, i32
  }
  func.func @transform_16(%arg0: i32) -> (i32, i32) {
    %c0_i32 = arith.constant 0 : i32
    %c0_i32_0 = arith.constant 0 : i32
    %c0_i32_1 = arith.constant 0 : i32
    return %c0_i32, %c0_i32_0 : i32, i32
  }
  func.func @transform_17(%arg0: i32) -> (i32, i32) {
    %c0_i32 = arith.constant 0 : i32
    %c0_i32_0 = arith.constant 0 : i32
    %c0_i32_1 = arith.constant 0 : i32
    return %c0_i32, %c0_i32_0 : i32, i32
  }
  func.func @transform_18(%arg0: i32) -> (i32, i32) {
    %c0_i32 = arith.constant 0 : i32
    %c0_i32_0 = arith.constant 0 : i32
    return %arg0, %c0_i32 : i32, i32
  }
  func.func @transform_19(%arg0: i32) -> (i32, i32) {
    %c0_i32 = arith.constant 0 : i32
    %c0_i32_0 = arith.constant 0 : i32
    return %arg0, %c0_i32 : i32, i32
  }
  func.func @transform_20(%arg0: i32) -> (i32, i32) {
    %c0_i32 = arith.constant 0 : i32
    %c0_i32_0 = arith.constant 0 : i32
    return %arg0, %c0_i32 : i32, i32
  }
}

</mosaic_0001>

<bundles_post_ra>
// kernel: mlp_icm_forward.1
= control target key start
LH: loop header
LB: loop body
LE: loop exit
PB: predicated region body
PF: predicated region fallthrough
CT: control target
= control target key end

     0   :  { %s2137_s0 = inlined_call_operand.vmem [shape: bf16[16,16], index: 0, kind: input, shape index: {}]   ;;  %s2138_s1 = inlined_call_operand.vmem [shape: bf16[16,16], index: 1, kind: input, shape index: {}]   ;;  %s2139_s2 = inlined_call_operand.vmem [shape: bf16[16,4], index: 2, kind: input, shape index: {}]   ;;  %s2140_s3 = inlined_call_operand.vmem [shape: bf16[16,128], index: 3, kind: input, shape index: {}]   ;;  %s2141_s4 = inlined_call_operand.vmem [shape: f32[1,128], index: 4, kind: input, shape index: {}]   ;;  %s2142_s5 = inlined_call_operand.vmem [shape: bf16[128,128], index: 5, kind: input, shape index: {}]   ;;  %s2143_s6 = inlined_call_operand.vmem [shape: f32[1,128], index: 6, kind: input, shape index: {}]   ;;  %s2144_s7 = inlined_call_operand.hbm [shape: bf16[128,128], index: 7, kind: input, shape index: {}]   ;;  %s2145_s8 = inlined_call_operand.vmem [shape: f32[1,128], index: 8, kind: input, shape index: {}]   ;;  %s2146_s9 = inlined_call_operand.vmem [shape: bf16[4,128], index: 9, kind: input, shape index: {}]   ;;  %s2147_s10 = inlined_call_operand.vmem [shape: f32[1,128], index: 10, kind: input, shape index: {}]   ;;  %s2148_s11 = inlined_call_operand.hbm [shape: bf16[128,256], index: 11, kind: input, shape index: {}]   ;;  %s2149_s12 = inlined_call_operand.hbm [shape: bf16[128,128], index: 12, kind: input, shape index: {}]   ;;  %s2150_s13 = inlined_call_operand.vmem [shape: f32[1,128], index: 13, kind: input, shape index: {}]   ;;  %s2151_s14 = inlined_call_operand.hbm [shape: bf16[256,256], index: 14, kind: input, shape index: {}]   ;;  %s2152_s15 = inlined_call_operand.vmem [shape: f32[1,256], index: 15, kind: input, shape index: {}]   ;;  %s2153_s16 = inlined_call_operand.hbm [shape: bf16[256,256], index: 16, kind: input, shape index: {}]   ;;  %s2154_s17 = inlined_call_operand.vmem [shape: f32[1,256], index: 17, kind: input, shape index: {}]   ;;  %s2155_s18 = inlined_call_operand.vmem [shape: bf16[16,128], index: 18, kind: output, shape index: {0}]   ;;  %s2156_s19 = inlined_call_operand.vmem [shape: bf16[16,128], index: 19, kind: output, shape index: {1}]   ;;  %s2157_s20 = inlined_call_operand.vmem [shape: bf16[16,4], index: 20, kind: output, shape index: {2}]  }
   0x1   :  { %2158 = sst [smem:[#allocation13_spill]] %s2137_s0 }
   0x2   :  { %2159 = sst [smem:[#allocation14_spill]] %s2138_s1 }
   0x3   :  { %2160 = sst [smem:[#allocation15_spill]] %s2139_s2 }
   0x4   :  { %2161 = sst [smem:[#allocation16_spill]] %s2140_s3 }
   0x5   :  { %2162 = sst [smem:[#allocation17_spill]] %s2141_s4 }
   0x6   :  { %2163 = sst [smem:[#allocation18_spill]] %s2156_s19 }
   0x7   :  { %26 = vsyncpa [#allocation3], 0 }
   0x8   :  { %27 = vsyncpa [#allocation5], 0 }
   0x9   :  { %28 = vsyncpa [#allocation8], 0  ;;  %s1862_s1 = smov [#allocation4]   ;;  %s1746_s2 = scalar_lea.hbm %s2148_s11, 2048 }
   0xa   :  { %s66_s22 = sshll.u32 %s1862_s1, 4  ;;  %p1747_p0 = scmp.ne.s32.totalorder %s2148_s11, %s1746_s2  ;;  %s67_s22 = int_to_ptr.vmem [resolvable:$true] %s66_s22 }
   0xb   :  { %p1750_p1 = scmp.lt.u32.totalorder %s1746_s2, %s2148_s11 }
   0xd   :  { %p1752_p2 = pnand %p1750_p1, %p1747_p0 }
   0xf   :  { %1755 = shalt.err (!%p1752_p2)
}
  0x10   :  { %s1756_s28 = scalar_lea.vmem %s67_s22, 2048  ;;  %p1761_p4 = scmp.lt.s32.totalorder %s67_s22, %s67_s22 }
  0x11   :  { %p1757_p3 = scmp.ne.s32.totalorder %s67_s22, %s1756_s28  ;;  %p1762_p5 = scmp.lt.s32.totalorder %s1756_s28, %s1756_s28 }
  0x13   :  { %p1763_p6 = por %p1762_p5, %p1761_p4 }
  0x15   :  { %p1764_p7 = pnand %p1763_p6, %p1757_p3 }
  0x17   :  { %1767 = shalt.err (!%p1764_p7)
}
  0x18   :  { %s1863_s4 = smov 128   ;;  %s1864_s29 = smov 8  }
  0x19   :  { %72 = dma.hbm_to_vmem [thread:$0]  %s2148_s11, 2048, %s67_s22, [#allocation5], %s1863_s4, %s1863_s4, %s1864_s29  }
  0x1a   :  { %s1865_s21 = smov [#allocation7]   ;;  %s1866_s23 = smov [#allocation2]  }
  0x1b   :  { %s92_s1 = sshll.u32 %s1865_s21, 4  ;;  %s48_s24 = sshll.u32 %s1866_s23, 4  ;;  %s93_s1 = int_to_ptr.vmem [resolvable:$true] %s92_s1  ;;  %s49_s24 = int_to_ptr.vmem [resolvable:$true] %s48_s24 }
  0x1c   :  { %s1768_s3 = scalar_lea.hbm %s2151_s14, 4096 }
  0x1d   :  { %p1769_p8 = scmp.ne.s32.totalorder %s2151_s14, %s1768_s3  ;;  %p1772_p9 = scmp.lt.u32.totalorder %s1768_s3, %s2151_s14 }
  0x1f   :  { %p1774_p10 = pnand %p1772_p9, %p1769_p8 }
  0x21   :  { %1777 = shalt.err (!%p1774_p10)
}
  0x22   :  { %s1778_s11 = scalar_lea.vmem %s93_s1, 4096  ;;  %p1783_p12 = scmp.lt.s32.totalorder %s93_s1, %s93_s1 }
  0x23   :  { %p1779_p11 = scmp.ne.s32.totalorder %s93_s1, %s1778_s11  ;;  %p1784_p13 = scmp.lt.s32.totalorder %s1778_s11, %s1778_s11 }
  0x25   :  { %p1785_p0 = por %p1784_p13, %p1783_p12 }
  0x27   :  { %p1786_p1 = pnand %p1785_p0, %p1779_p11 }
  0x29   :  { %1789 = shalt.err (!%p1786_p1)
}
  0x2a   :  { %98 = dma.hbm_to_vmem [thread:$0]  %s2151_s14, 4096, %s93_s1, [#allocation8], %s1863_s4, %s1863_s4, %s1864_s29  }
  0x2b   :  { %s1790_s21 = scalar_lea.hbm %s2144_s7, 1024 }
  0x2c   :  { %p1791_p2 = scmp.ne.s32.totalorder %s2144_s7, %s1790_s21  ;;  %p1794_p3 = scmp.lt.u32.totalorder %s1790_s21, %s2144_s7 }
  0x2e   :  { %p1796_p4 = pnand %p1794_p3, %p1791_p2 }
  0x30   :  { %1799 = shalt.err (!%p1796_p4)
}
  0x31   :  { %s1800_s26 = scalar_lea.vmem %s49_s24, 1024  ;;  %p1805_p6 = scmp.lt.s32.totalorder %s49_s24, %s49_s24 }
  0x32   :  { %p1801_p5 = scmp.ne.s32.totalorder %s49_s24, %s1800_s26  ;;  %p1806_p7 = scmp.lt.s32.totalorder %s1800_s26, %s1800_s26 }
  0x34   :  { %p1807_p8 = por %p1806_p7, %p1805_p6 }
  0x36   :  { %p1808_p9 = pnand %p1807_p8, %p1801_p5 }
  0x38   :  { %1811 = shalt.err (!%p1808_p9)
}
  0x39   :  { %s1867_s14 = smov 64   ;;  %s1868_s1 = smov 4  }
  0x3a   :  { %54 = dma.hbm_to_vmem [thread:$0]  %s2144_s7, 1024, %s49_s24, [#allocation3], %s1867_s14, %s1867_s14, %s1868_s1  }
  0x3b   :  { %s1869_s11 = smov [#allocation6]   ;;  %s1870_s30 = smov [#allocation9]  }
  0x3c   :  { %s78_s22 = sshll.u32 %s1869_s11, 4  ;;  %s106_s0 = sshll.u32 %s1870_s30, 4  ;;  %s79_s22 = int_to_ptr.vmem [resolvable:$true] %s78_s22  ;;  %s107_s0 = int_to_ptr.vmem [resolvable:$true] %s106_s0 }
  0x3d   :  { %s1812_s23 = scalar_lea.hbm %s2149_s12, 1024 }
  0x3e   :  { %p1813_p10 = scmp.ne.s32.totalorder %s2149_s12, %s1812_s23  ;;  %p1816_p11 = scmp.lt.u32.totalorder %s1812_s23, %s2149_s12 }
  0x40   :  { %p1818_p12 = pnand %p1816_p11, %p1813_p10 }
  0x42   :  { %1821 = shalt.err (!%p1818_p12)
}
  0x43   :  { %s1822_s7 = scalar_lea.vmem %s79_s22, 1024  ;;  %p1827_p0 = scmp.lt.s32.totalorder %s79_s22, %s79_s22 }
  0x44   :  { %p1823_p13 = scmp.ne.s32.totalorder %s79_s22, %s1822_s7  ;;  %p1828_p1 = scmp.lt.s32.totalorder %s1822_s7, %s1822_s7 }
  0x46   :  { %p1829_p2 = por %p1828_p1, %p1827_p0 }
  0x48   :  { %p1830_p3 = pnand %p1829_p2, %p1823_p13 }
  0x4a   :  { %1833 = shalt.err (!%p1830_p3)
}
  0x4b   :  { %84 = dma.hbm_to_vmem [thread:$0]  %s2149_s12, 1024, %s79_s22, [#allocation5], %s1867_s14, %s1867_s14, %s1868_s1  }
  0x4c   :  { %s1834_s30 = scalar_lea.hbm %s2153_s16, 4096 }
  0x4d   :  { %p1835_p4 = scmp.ne.s32.totalorder %s2153_s16, %s1834_s30  ;;  %p1838_p5 = scmp.lt.u32.totalorder %s1834_s30, %s2153_s16 }
  0x4f   :  { %p1840_p6 = pnand %p1838_p5, %p1835_p4 }
  0x51   :  { %1843 = shalt.err (!%p1840_p6)
}
  0x52   :  { %s1844_s25 = scalar_lea.vmem %s107_s0, 4096  ;;  %p1849_p8 = scmp.lt.s32.totalorder %s107_s0, %s107_s0 }
  0x53   :  { %p1845_p7 = scmp.ne.s32.totalorder %s107_s0, %s1844_s25  ;;  %p1850_p9 = scmp.lt.s32.totalorder %s1844_s25, %s1844_s25 }
  0x55   :  { %p1851_p10 = por %p1850_p9, %p1849_p8 }
  0x57   :  { %p1852_p11 = pnand %p1851_p10, %p1845_p7 }
  0x59   :  { %1855 = shalt.err (!%p1852_p11)
}
  0x5a   :  { %112 = dma.hbm_to_vmem [thread:$0]  %s2153_s16, 4096, %s107_s0, [#allocation8], %s1863_s4, %s1863_s4, %s1864_s29  }
  0x5b   :  { %1856 = dma.done.wait [#allocation3], 1024  }
  0x5c   :  { %1857 = vsyncadd [#allocation3], 4294966272 }
  0x5d   :  { %1858 = dma.done.wait [#allocation5], 3072  }
  0x5e   :  { %1859 = vsyncadd [#allocation5], 4294964224 }
  0x5f   :  { %1860 = dma.done.wait [#allocation8], 8192  }
  0x60   :  { %1861 = vsyncadd [#allocation8], 4294959104  ;;  %s2164_s3 = sld [smem:[#allocation16_spill]]  ;;  %vm160_vm0 = vcmask 130048   ;;  %s2165_s24 = sld [smem:[#allocation13_spill]]  ;;  %v1601_v3 = vld [vmem:[%s2142_s5] sm:$0xff]  }
  0x61   :  { %s2166_s11 = sld [smem:[#allocation14_spill]]  ;;  %v1602_v4 = vld [vmem:[%s2142_s5 + $0x8] sm:$0xff]   ;;  %v1603_v5 = vld [vmem:[%s2142_s5 + $0x10] sm:$0xff]   ;;  %v1604_v6 = vld [vmem:[%s2142_s5 + $0x18] sm:$0xff]   ;;  %v1871_v34 = vmov 0.0   ;;  %vm620_vm1 = vcmask 1041408  }
  0x62   :  { %v1605_v7 = vld [vmem:[%s2142_s5 + $0x20] sm:$0xff]   ;;  %v1606_v8 = vld [vmem:[%s2142_s5 + $0x28] sm:$0xff]   ;;  %v1607_v9 = vld [vmem:[%s2142_s5 + $0x30] sm:$0xff]   ;;  %vm1872_vm2 = vmmov 0   ;;  %s2168_s29 = sld [smem:[#allocation15_spill]]  ;;  %vm616_vm3 = vcmask 31744  }
  0x63   :  { %v1608_v10 = vld [vmem:[%s2142_s5 + $0x38] sm:$0xff]   ;;  %v1609_v11 = vld [vmem:[#allocation2] sm:$0xff]   ;;  %v1610_v12 = vld [vmem:[#allocation2 + $0x8] sm:$0xff]   ;;  %vm1324_vm4 = vcmask 27648   ;;  %s2169_s1 = sld [smem:[#allocation18_spill]] }
  0x64   :  { %1540 = vmatprep.subr.bf16.mxu0 %v1609_v11  ;;  %v1611_v13 = vld [vmem:[#allocation2 + $0x10] sm:$0xff]   ;;  %v1612_v14 = vld [vmem:[#allocation2 + $0x18] sm:$0xff]   ;;  %v1613_v15 = vld [vmem:[#allocation2 + $0x20] sm:$0xff]  }
  0x65   :  { %1541 = vmatpush3.bf16.msra.mxu0 %v1609_v11  ;;  %v1614_v16 = vld [vmem:[#allocation2 + $0x28] sm:$0xff]   ;;  %v1615_v32 = vld [vmem:[#allocation2 + $0x30] sm:$0xff]   ;;  %v1616_v33 = vld [vmem:[#allocation2 + $0x38] sm:$0xff]  }
  0x66   :  { %v1598_v0 = vld [vmem:[%s2164_s3] sm:$0xff]   ;;  %1542 = vmatprep.subr.bf16.mxu0 %v1610_v12  ;;  %v1624_v37 = vld [vmem:[#allocation4 + $0x14] ss:$8 sps:$4 sm:$0xff]   ;;  %v1622_v38 = vld [vmem:[#allocation4 + $0x10] ss:$8 sps:$4 sm:$0xff]  }
  0x67   :  { %v1599_v1 = vld [vmem:[%s2165_s24] sm:$0xff]   ;;  %1514 = vmatprep.subr.bf16.mxu1 %v1598_v0  ;;  %s2167_s24 = sld [smem:[#allocation17_spill]]  ;;  %v1632_v41 = vld [vmem:[#allocation4 + $0x34] ss:$8 sps:$4 sm:$0xff]   ;;  %v1630_v42 = vld [vmem:[#allocation4 + $0x30] ss:$8 sps:$4 sm:$0xff]  }
  0x68   :  { %v1600_v2 = vld [vmem:[%s2166_s11] sm:$0xff]   ;;  %1515 = vmatpush3.bf16.msra.mxu1 %v1598_v0  ;;  %1516 = vmatprep.mubr.msk.bf16.mxu1 %vm160_vm0, %v1599_v1  ;;  %v1640_v45 = vld [vmem:[#allocation4 + $0x54] ss:$8 sps:$4 sm:$0xff]   ;;  %v1638_v46 = vld [vmem:[#allocation4 + $0x50] ss:$8 sps:$4 sm:$0xff]  }
  0x69   :  { %1520 = vmatprep.subr.bf16.mxu1 %v1601_v3  ;;  %1543 = vmatpush3.bf16.msra.mxu0 %v1610_v12  ;;  %v1618_v35 = vld [vmem:[#allocation4] ss:$8 sps:$4 sm:$0xff]   ;;  %v1620_v36 = vld [vmem:[#allocation4 + $0x4] ss:$8 sps:$4 sm:$0xff]   ;;  %v1649_v11 = vld [vmem:[#allocation6 + $0x38] sm:$0xff]  }
  0x6a   :  { %1544 = vmatprep.subr.bf16.mxu0 %v1611_v13  ;;  %v1628_v39 = vld [vmem:[#allocation4 + $0x24] ss:$8 sps:$4 sm:$0xff]   ;;  %v1626_v40 = vld [vmem:[#allocation4 + $0x20] ss:$8 sps:$4 sm:$0xff]   ;;  %v1646_v12 = vld [vmem:[#allocation4 + $0x70] ss:$8 sps:$4 sm:$0xff]  }
  0x6b   :  { %1517 = vmatmul.mubr.msk.bf16.vlgmr.msra.gmra.mrb[0].mxu1 %vm160_vm0, %v1600_v2  ;;  %v1636_v43 = vld [vmem:[#allocation4 + $0x44] ss:$8 sps:$4 sm:$0xff]   ;;  %v1634_v44 = vld [vmem:[#allocation4 + $0x40] ss:$8 sps:$4 sm:$0xff]  }
  0x6c   :  { %1521 = vmatpush3.bf16.msra.mxu1 %v1601_v3  ;;  %v1348_v47 = vld [vmem:[%s2143_s6] ss:$0 sm:$0xff]  ;;  %v1625_v2 = vld [vmem:[#allocation6 + $0x8] sm:$0xff]   ;;  %v1629_v3 = vld [vmem:[#allocation6 + $0x10] sm:$0xff]  }
  0x6d   :  { %1522 = vmatprep.subr.bf16.mxu1 %v1602_v4  ;;  %1545 = vmatpush3.bf16.msra.mxu0 %v1611_v13  ;;  %v1344_v17 = vld [vmem:[%s2167_s24] ss:$0 sm:$0xff]  ;;  %v1873_v13 = vmov 0  }
  0x6e   :  { %1546 = vmatprep.subr.bf16.mxu0 %v1612_v14  ;;  %v610_v60 = vld [vmem:[%s2146_s9] sm:$0x3] }
  0x6f   :  { %v622_v63 = vsel %vm620_vm1, %v610_v60, 0  ;;  %v1617_v0 = vld [vmem:[%s2168_s29] sm:$0xff]   ;;  %v1695_v60 = vld [vmem:[#allocation7 + $0xf0] ss:$8 sps:$4 sm:$0xff]  }
  0x70   :  { %1523 = vmatpush3.bf16.msra.mxu1 %v1602_v4  ;;  %v1621_v1 = vld [vmem:[#allocation6] sm:$0xff]   ;;  %v1633_v4 = vld [vmem:[#allocation6 + $0x18] sm:$0xff]  }
  0x71   :  { %1524 = vmatprep.subr.bf16.mxu1 %v1603_v5  ;;  %1547 = vmatpush3.bf16.msra.mxu0 %v1612_v14  ;;  %v1652_v14 = vld [vmem:[#allocation7 + $0x4] ss:$8 sps:$4 sm:$0xff]  }
  0x72   :  { %1548 = vmatprep.subr.bf16.mxu0 %v1613_v15 }
  0x74   :  { %1525 = vmatpush3.bf16.msra.mxu1 %v1603_v5  ;;  %v1637_v5 = vld [vmem:[#allocation6 + $0x20] sm:$0xff]  }
  0x75   :  { %1526 = vmatprep.subr.bf16.mxu1 %v1604_v6  ;;  %1549 = vmatpush3.bf16.msra.mxu0 %v1613_v15 }
  0x76   :  { %1550 = vmatprep.subr.bf16.mxu0 %v1614_v16 }
  0x78   :  { %1527 = vmatpush3.bf16.msra.mxu1 %v1604_v6  ;;  %v1641_v6 = vld [vmem:[#allocation6 + $0x28] sm:$0xff]  }
  0x79   :  { %1528 = vmatprep.subr.bf16.mxu1 %v1605_v7  ;;  %1551 = vmatpush3.bf16.msra.mxu0 %v1614_v16  ;;  %v1357_v16 = vld [vmem:[%s2145_s8] ss:$0 sm:$0xff] }
  0x7a   :  { %1552 = vmatprep.subr.bf16.mxu0 %v1615_v32 }
  0x7c   :  { %1529 = vmatpush3.bf16.msra.mxu1 %v1605_v7  ;;  %v1644_v7 = vld [vmem:[#allocation4 + $0x64] ss:$8 sps:$4 sm:$0xff]  }
  0x7d   :  { %1530 = vmatprep.subr.bf16.mxu1 %v1606_v8  ;;  %1553 = vmatpush3.bf16.msra.mxu0 %v1615_v32 }
  0x7e   :  { %1554 = vmatprep.subr.bf16.mxu0 %v1616_v33 }
  0x80   :  { %1531 = vmatpush3.bf16.msra.mxu1 %v1606_v8  ;;  %v1645_v8 = vld [vmem:[#allocation6 + $0x30] sm:$0xff]  }
  0x81   :  { %1532 = vmatprep.subr.bf16.mxu1 %v1607_v9  ;;  %1555 = vmatpush3.bf16.msra.mxu0 %v1616_v33 }
  0x82   :  { %1560 = vmatprep.subr.bf16.mxu0 %v1871_v34 }
  0x84   :  { %1533 = vmatpush3.bf16.msra.mxu1 %v1607_v9  ;;  %v1642_v9 = vld [vmem:[#allocation4 + $0x60] ss:$8 sps:$4 sm:$0xff]  }
  0x85   :  { %1534 = vmatprep.subr.bf16.mxu1 %v1608_v10 }
  0x88   :  { %1535 = vmatpush3.bf16.msra.mxu1 %v1608_v10  ;;  %v1648_v10 = vld [vmem:[#allocation4 + $0x74] ss:$8 sps:$4 sm:$0xff]  }
  0x89   :  { %565 = vmatprep.subr.bf16.mxu1 %v1620_v36  ;;  %v1659_v36 = vld [vmem:[#allocation7 + $0x30] ss:$8 sps:$4 sm:$0xff]  }
 0x13e   :  { %v1518_v18 = vpop.f32.mrb[0].mxu1 }
 0x13f   :  { %v210_v19 = vadd.f32 %v1518_v18, %v1344_v17  ;;  %v201_v20 = vpop.f32.mrb[1].mxu1 }
 0x140   :  { %v202_v21 = vadd.f32 %v1344_v17, %v201_v20  ;;  %v1519_v22 = vpop.f32.mrb[2].mxu1 }
 0x141   :  { %v213_v23 = vadd.f32 %v1519_v22, %v1344_v17  ;;  %v204_v24 = vpop.f32.mrb[3].mxu1  ;;  %v218_v26 = vmax.f32 %v210_v19, 0.0 }
 0x142   :  { %v205_v25 = vadd.f32 %v1344_v17, %v204_v24  ;;  %v216_v28 = vmax.f32 %v202_v21, 0.0 }
 0x143   :  { %v219_v27 = vmax.f32 %v213_v23, 0.0 }
 0x144   :  { %v217_v29 = vmax.f32 %v205_v25, 0.0  ;;  %v1650_v25 = vld [vmem:[#allocation7] ss:$8 sps:$4 sm:$0xff]  }
 0x145   :  { %v221_v30 = vpack.c.bf16 %v219_v27, %v218_v26  ;;  %v1655_v27 = vld [vmem:[#allocation7 + $0x14] ss:$8 sps:$4 sm:$0xff]  }
 0x146   :  { %v220_v31 = vpack.c.bf16 %v217_v29, %v216_v28  ;;  %v1653_v29 = vld [vmem:[#allocation7 + $0x10] ss:$8 sps:$4 sm:$0xff]  }
 0x148   :  { %1536 = vmatprep.mubr.bf16.mxu1 %v220_v31  ;;  %v1658_v31 = vld [vmem:[#allocation7 + $0x24] ss:$8 sps:$4 sm:$0xff]  }
 0x149   :  { %1537 = vmatmul.mubr.bf16.vlgmr.msra.gmra.mrb[4].mxu1 %v221_v30 }
 0x14a   :  { %566 = vmatpush1.bf16.msra.mxu1 %v1618_v35  ;;  %597 = vmatprep.mubr.bf16.mxu1 %v1873_v13  ;;  %v1661_v35 = vld [vmem:[#allocation7 + $0x34] ss:$8 sps:$4 sm:$0xff]   ;;  %v1724_v13 = vld [vmem:[#allocation9 + $0x84] ss:$8 sps:$4 sm:$0xff]  }
 0x14b   :  { %567 = vmatprep.subr.bf16.mxu1 %v1624_v37  ;;  %v1664_v37 = vld [vmem:[#allocation7 + $0x44] ss:$8 sps:$4 sm:$0xff]  }
 0x14e   :  { %568 = vmatpush1.bf16.msra.mxu1 %v1622_v38  ;;  %v1662_v38 = vld [vmem:[#allocation7 + $0x40] ss:$8 sps:$4 sm:$0xff]  }
 0x14f   :  { %569 = vmatprep.subr.bf16.mxu1 %v1628_v39  ;;  %v1667_v39 = vld [vmem:[#allocation7 + $0x54] ss:$8 sps:$4 sm:$0xff]  }
 0x152   :  { %570 = vmatpush1.bf16.msra.mxu1 %v1626_v40  ;;  %v1665_v40 = vld [vmem:[#allocation7 + $0x50] ss:$8 sps:$4 sm:$0xff]  }
 0x153   :  { %571 = vmatprep.subr.bf16.mxu1 %v1632_v41  ;;  %v1670_v41 = vld [vmem:[#allocation7 + $0x64] ss:$8 sps:$4 sm:$0xff]  }
 0x156   :  { %572 = vmatpush1.bf16.msra.mxu1 %v1630_v42  ;;  %v1668_v42 = vld [vmem:[#allocation7 + $0x60] ss:$8 sps:$4 sm:$0xff]  }
 0x157   :  { %573 = vmatprep.subr.bf16.mxu1 %v1636_v43  ;;  %v1673_v43 = vld [vmem:[#allocation7 + $0x74] ss:$8 sps:$4 sm:$0xff]  }
 0x15a   :  { %574 = vmatpush1.bf16.msra.mxu1 %v1634_v44  ;;  %v1671_v44 = vld [vmem:[#allocation7 + $0x70] ss:$8 sps:$4 sm:$0xff]  }
 0x15b   :  { %575 = vmatprep.subr.bf16.mxu1 %v1640_v45  ;;  %v1676_v45 = vld [vmem:[#allocation7 + $0x84] ss:$8 sps:$4 sm:$0xff]  }
 0x15e   :  { %576 = vmatpush1.bf16.msra.mxu1 %v1638_v46  ;;  %v1674_v46 = vld [vmem:[#allocation7 + $0x80] ss:$8 sps:$4 sm:$0xff]  }
 0x15f   :  { %577 = vmatprep.subr.bf16.mxu1 %v1644_v7  ;;  %v1715_v7 = vld [vmem:[#allocation9 + $0x54] ss:$8 sps:$4 sm:$0xff]  }
 0x162   :  { %578 = vmatpush1.bf16.msra.mxu1 %v1642_v9  ;;  %v1718_v9 = vld [vmem:[#allocation9 + $0x64] ss:$8 sps:$4 sm:$0xff]  }
 0x163   :  { %579 = vmatprep.subr.bf16.mxu1 %v1648_v10  ;;  %v1716_v10 = vld [vmem:[#allocation9 + $0x60] ss:$8 sps:$4 sm:$0xff]  }
 0x166   :  { %580 = vmatpush1.bf16.msra.mxu1 %v1646_v12  ;;  %v1719_v12 = vld [vmem:[#allocation9 + $0x70] ss:$8 sps:$4 sm:$0xff]  }
 0x167   :  { %1001 = vmatprep.subr.bf16.mxu1 %v1652_v14  ;;  %v1722_v14 = vld [vmem:[#allocation9 + $0x80] ss:$8 sps:$4 sm:$0xff]  }
 0x21c   :  { %v1538_v48 = vpop.f32.mrb[4].mxu1 }
 0x21d   :  { %v336_v49 = vadd.f32 %v1538_v48, %v1348_v47  ;;  %v327_v50 = vpop.f32.mrb[5].mxu1  ;;  %v1677_v48 = vld [vmem:[#allocation7 + $0x90] ss:$8 sps:$4 sm:$0xff]  }
 0x21e   :  { %v328_v51 = vadd.f32 %v1348_v47, %v327_v50  ;;  %v1539_v52 = vpop.f32.mrb[6].mxu1  ;;  %v1680_v50 = vld [vmem:[#allocation7 + $0xa0] ss:$8 sps:$4 sm:$0xff]  }
 0x21f   :  { %v339_v53 = vadd.f32 %v1539_v52, %v1348_v47  ;;  %v330_v54 = vpop.f32.mrb[7].mxu1  ;;  %v344_v56 = vmax.f32 %v336_v49, 0.0  ;;  %v1682_v49 = vld [vmem:[#allocation7 + $0xa4] ss:$8 sps:$4 sm:$0xff]   ;;  %v1683_v52 = vld [vmem:[#allocation7 + $0xb0] ss:$8 sps:$4 sm:$0xff]  }
 0x220   :  { %v331_v55 = vadd.f32 %v1348_v47, %v330_v54  ;;  %v342_v58 = vmax.f32 %v328_v51, 0.0  ;;  %v1679_v47 = vld [vmem:[#allocation7 + $0x94] ss:$8 sps:$4 sm:$0xff]   ;;  %v1686_v54 = vld [vmem:[#allocation7 + $0xc0] ss:$8 sps:$4 sm:$0xff]  }
 0x221   :  { %v345_v57 = vmax.f32 %v339_v53, 0.0  ;;  %v1685_v51 = vld [vmem:[#allocation7 + $0xb4] ss:$8 sps:$4 sm:$0xff]   ;;  %v1688_v53 = vld [vmem:[#allocation7 + $0xc4] ss:$8 sps:$4 sm:$0xff]  }
 0x222   :  { %v343_v59 = vmax.f32 %v331_v55, 0.0  ;;  %v1691_v55 = vld [vmem:[#allocation7 + $0xd4] ss:$8 sps:$4 sm:$0xff]  }
 0x223   :  { %v347_v61 = vpack.c.bf16 %v345_v57, %v344_v56  ;;  %v1689_v56 = vld [vmem:[#allocation7 + $0xd0] ss:$8 sps:$4 sm:$0xff]   ;;  %v1694_v57 = vld [vmem:[#allocation7 + $0xe4] ss:$8 sps:$4 sm:$0xff]  }
 0x224   :  { %v346_v62 = vpack.c.bf16 %v343_v59, %v342_v58  ;;  %v1692_v58 = vld [vmem:[#allocation7 + $0xe0] ss:$8 sps:$4 sm:$0xff]   ;;  %v1697_v59 = vld [vmem:[#allocation7 + $0xf4] ss:$8 sps:$4 sm:$0xff]  }
 0x226   :  { %1556 = vmatprep.mubr.bf16.mxu0 %v346_v62  ;;  %v1700_v62 = vld [vmem:[#allocation9 + $0x4] ss:$8 sps:$4 sm:$0xff]  }
 0x227   :  { %1557 = vmatmul.mubr.bf16.vlgmr.msra.gmra.mrb[0].mxu0 %v347_v61  ;;  %v1698_v61 = vld [vmem:[#allocation9] ss:$8 sps:$4 sm:$0xff]  }
 0x228   :  { %1561 = vmatpush3.bf16.msra.mxu0 %v622_v63  ;;  %1562 = vmatprep.mubr.msk.bf16.mxu0 %vm1872_vm2, %v1871_v34  ;;  %v1703_v63 = vld [vmem:[#allocation9 + $0x14] ss:$8 sps:$4 sm:$0xff]  }
 0x229   :  { %1566 = vmatprep.subr.bf16.mxu0 %v1871_v34 }
 0x22f   :  { %1563 = vmatmul.mubr.msk.bf16.vlgmr.msra.gmra.mrb[4].mxu0 %vm616_vm3, %v1617_v0  ;;  %v1701_v0 = vld [vmem:[#allocation9 + $0x10] ss:$8 sps:$4 sm:$0xff]  }
 0x230   :  { %1567 = vmatpush3.bf16.msra.mxu0 %v1621_v1  ;;  %1582 = vmatprep.mubr.msk.bf16.mxu0 %vm1872_vm2, %v1871_v34  ;;  %v1706_v1 = vld [vmem:[#allocation9 + $0x24] ss:$8 sps:$4 sm:$0xff]  }
 0x231   :  { %1568 = vmatprep.subr.bf16.mxu0 %v1871_v34 }
 0x234   :  { %1569 = vmatpush3.bf16.msra.mxu0 %v1625_v2  ;;  %v1704_v2 = vld [vmem:[#allocation9 + $0x20] ss:$8 sps:$4 sm:$0xff]  }
 0x235   :  { %1570 = vmatprep.subr.bf16.mxu0 %v1871_v34 }
 0x238   :  { %1571 = vmatpush3.bf16.msra.mxu0 %v1629_v3  ;;  %v1709_v3 = vld [vmem:[#allocation9 + $0x34] ss:$8 sps:$4 sm:$0xff]  }
 0x239   :  { %1572 = vmatprep.subr.bf16.mxu0 %v1871_v34 }
 0x23c   :  { %1573 = vmatpush3.bf16.msra.mxu0 %v1633_v4  ;;  %v1707_v4 = vld [vmem:[#allocation9 + $0x30] ss:$8 sps:$4 sm:$0xff]  }
 0x23d   :  { %1574 = vmatprep.subr.bf16.mxu0 %v1871_v34 }
 0x240   :  { %1575 = vmatpush3.bf16.msra.mxu0 %v1637_v5  ;;  %v1712_v5 = vld [vmem:[#allocation9 + $0x44] ss:$8 sps:$4 sm:$0xff]  }
 0x241   :  { %1576 = vmatprep.subr.bf16.mxu0 %v1871_v34 }
 0x244   :  { %1577 = vmatpush3.bf16.msra.mxu0 %v1641_v6  ;;  %v1710_v6 = vld [vmem:[#allocation9 + $0x40] ss:$8 sps:$4 sm:$0xff]  }
 0x245   :  { %1578 = vmatprep.subr.bf16.mxu0 %v1871_v34 }
 0x248   :  { %1579 = vmatpush3.bf16.msra.mxu0 %v1645_v8  ;;  %v1713_v8 = vld [vmem:[#allocation9 + $0x50] ss:$8 sps:$4 sm:$0xff]  }
 0x249   :  { %1580 = vmatprep.subr.bf16.mxu0 %v1871_v34  ;;  %v1656_v34 = vld [vmem:[#allocation7 + $0x20] ss:$8 sps:$4 sm:$0xff]  }
 0x24c   :  { %1581 = vmatpush3.bf16.msra.mxu0 %v1649_v11  ;;  %v1721_v11 = vld [vmem:[#allocation9 + $0x74] ss:$8 sps:$4 sm:$0xff]  }
 0x24d   :  { %1254 = vmatprep.subr.bf16.mxu0 %v1700_v62 }
 0x2fa   :  { %v1558_v15 = vpop.f32.mrb[0].mxu0 }
 0x2fb   :  { %v453_v17 = vpop.f32.mrb[1].mxu0  ;;  %v462_v19 = vadd.f32 %v1558_v15, %v1357_v16  ;;  %v1727_v15 = vld [vmem:[#allocation9 + $0x94] ss:$8 sps:$4 sm:$0xff]  }
 0x2fc   :  { %v1559_v18 = vpop.f32.mrb[2].mxu0  ;;  %v454_v22 = vadd.f32 %v1357_v16, %v453_v17  ;;  %v1730_v17 = vld [vmem:[#allocation9 + $0xa4] ss:$8 sps:$4 sm:$0xff]  }
 0x2fd   :  { %v465_v20 = vadd.f32 %v1559_v18, %v1357_v16  ;;  %v456_v21 = vpop.f32.mrb[3].mxu0  ;;  %v1728_v18 = vld [vmem:[#allocation9 + $0xa0] ss:$8 sps:$4 sm:$0xff]  }
 0x2fe   :  { %v457_v23 = vadd.f32 %v1357_v16, %v456_v21  ;;  %v1725_v16 = vld [vmem:[#allocation9 + $0x90] ss:$8 sps:$4 sm:$0xff]   ;;  %v1736_v21 = vld [vmem:[#allocation9 + $0xc4] ss:$8 sps:$4 sm:$0xff]  }
 0x2ff   :  { %v676_v24 = vpack.c.bf16 %v465_v20, %v462_v19  ;;  %v1733_v19 = vld [vmem:[#allocation9 + $0xb4] ss:$8 sps:$4 sm:$0xff]   ;;  %v1731_v20 = vld [vmem:[#allocation9 + $0xb0] ss:$8 sps:$4 sm:$0xff]  }
 0x300   :  { %v468_v26 = vpack.c.bf16 %v457_v23, %v454_v22  ;;  %v1734_v22 = vld [vmem:[#allocation9 + $0xc0] ss:$8 sps:$4 sm:$0xff]   ;;  %v1739_v23 = vld [vmem:[#allocation9 + $0xd4] ss:$8 sps:$4 sm:$0xff]  }
 0x301   :  { %1474 = vst [vmem:[%s2155_s18] sm:$0xff] %v676_v24   ;;  %1583 = vmatmul.mubr.bf16.vlgmr.msra.gmra.mrb[8].mxu0 %v676_v24  ;;  %v1737_v24 = vld [vmem:[#allocation9 + $0xd0] ss:$8 sps:$4 sm:$0xff]  }
 0x302   :  { %598 = vmatmul.mubr.bf16.vlgmr.msra.gmra.mrb[8].mxu1 %v468_v26  ;;  %v2110_v28 = vpop.f32.mrb[4].mxu0  ;;  %1255 = vmatpush1.bf16.msra.mxu0 %v1698_v61 }
 0x303   :  { %1002 = vmatpush1.bf16.msra.mxu1 %v1650_v25  ;;  %v1564_v30 = vpop.f32.mrb[5].mxu0  ;;  %1256 = vmatprep.subr.bf16.mxu0 %v1703_v63 }
 0x304   :  { %1003 = vmatprep.subr.bf16.mxu1 %v1655_v27  ;;  %v2112_v32 = vpop.f32.mrb[6].mxu0  ;;  %v1384_v27 = vld [vmem:[%s2147_s10] ss:$0 sm:$0xff] }
 0x305   :  { %v1565_v33 = vpop.f32.mrb[7].mxu0 }
 0x306   :  { %1257 = vmatpush1.bf16.msra.mxu0 %v1701_v0  ;;  %v1393_v33 = vld [vmem:[%s2150_s13] ss:$0 sm:$0xff] }
 0x307   :  { %1004 = vmatpush1.bf16.msra.mxu1 %v1653_v29  ;;  %1258 = vmatprep.subr.bf16.mxu0 %v1706_v1 }
 0x308   :  { %1005 = vmatprep.subr.bf16.mxu1 %v1658_v31 }
 0x30a   :  { %1259 = vmatpush1.bf16.msra.mxu0 %v1704_v2 }
 0x30b   :  { %1006 = vmatpush1.bf16.msra.mxu1 %v1656_v34  ;;  %1260 = vmatprep.subr.bf16.mxu0 %v1709_v3 }
 0x30c   :  { %1007 = vmatprep.subr.bf16.mxu1 %v1661_v35 }
 0x30e   :  { %1261 = vmatpush1.bf16.msra.mxu0 %v1707_v4 }
 0x30f   :  { %1008 = vmatpush1.bf16.msra.mxu1 %v1659_v36  ;;  %1262 = vmatprep.subr.bf16.mxu0 %v1712_v5 }
 0x310   :  { %1009 = vmatprep.subr.bf16.mxu1 %v1664_v37 }
 0x312   :  { %1263 = vmatpush1.bf16.msra.mxu0 %v1710_v6 }
 0x313   :  { %1010 = vmatpush1.bf16.msra.mxu1 %v1662_v38  ;;  %1264 = vmatprep.subr.bf16.mxu0 %v1715_v7 }
 0x314   :  { %1011 = vmatprep.subr.bf16.mxu1 %v1667_v39 }
 0x316   :  { %1265 = vmatpush1.bf16.msra.mxu0 %v1713_v8 }
 0x317   :  { %1012 = vmatpush1.bf16.msra.mxu1 %v1665_v40  ;;  %1266 = vmatprep.subr.bf16.mxu0 %v1718_v9 }
 0x318   :  { %1013 = vmatprep.subr.bf16.mxu1 %v1670_v41 }
 0x31a   :  { %1267 = vmatpush1.bf16.msra.mxu0 %v1716_v10  ;;  %v1082_v10 = vld [vmem:[%s2154_s17] sm:$0x3] }
 0x31b   :  { %1014 = vmatpush1.bf16.msra.mxu1 %v1668_v42  ;;  %1268 = vmatprep.subr.bf16.mxu0 %v1721_v11 }
 0x31c   :  { %1015 = vmatprep.subr.bf16.mxu1 %v1673_v43 }
 0x31e   :  { %1269 = vmatpush1.bf16.msra.mxu0 %v1719_v12 }
 0x31f   :  { %1016 = vmatpush1.bf16.msra.mxu1 %v1671_v44  ;;  %1270 = vmatprep.subr.bf16.mxu0 %v1724_v13 }
 0x320   :  { %1017 = vmatprep.subr.bf16.mxu1 %v1676_v45 }
 0x322   :  { %1271 = vmatpush1.bf16.msra.mxu0 %v1722_v14 }
 0x323   :  { %1018 = vmatpush1.bf16.msra.mxu1 %v1674_v46  ;;  %1272 = vmatprep.subr.bf16.mxu0 %v1727_v15 }
 0x324   :  { %1019 = vmatprep.subr.bf16.mxu1 %v1679_v47 }
 0x326   :  { %1273 = vmatpush1.bf16.msra.mxu0 %v1725_v16 }
 0x327   :  { %1020 = vmatpush1.bf16.msra.mxu1 %v1677_v48  ;;  %1274 = vmatprep.subr.bf16.mxu0 %v1730_v17 }
 0x328   :  { %1021 = vmatprep.subr.bf16.mxu1 %v1682_v49 }
 0x32a   :  { %1275 = vmatpush1.bf16.msra.mxu0 %v1728_v18 }
 0x32b   :  { %1022 = vmatpush1.bf16.msra.mxu1 %v1680_v50  ;;  %1276 = vmatprep.subr.bf16.mxu0 %v1733_v19  ;;  %v1742_v50 = vld [vmem:[#allocation9 + $0xe4] ss:$8 sps:$4 sm:$0xff]  }
 0x32c   :  { %1023 = vmatprep.subr.bf16.mxu1 %v1685_v51  ;;  %v1740_v51 = vld [vmem:[#allocation9 + $0xe0] ss:$8 sps:$4 sm:$0xff]  }
 0x32e   :  { %1277 = vmatpush1.bf16.msra.mxu0 %v1731_v20 }
 0x32f   :  { %1024 = vmatpush1.bf16.msra.mxu1 %v1683_v52  ;;  %1278 = vmatprep.subr.bf16.mxu0 %v1736_v21  ;;  %v1745_v52 = vld [vmem:[#allocation9 + $0xf4] ss:$8 sps:$4 sm:$0xff]  }
 0x330   :  { %1025 = vmatprep.subr.bf16.mxu1 %v1688_v53  ;;  %v1743_v53 = vld [vmem:[#allocation9 + $0xf0] ss:$8 sps:$4 sm:$0xff]  }
 0x332   :  { %1279 = vmatpush1.bf16.msra.mxu0 %v1734_v22 }
 0x333   :  { %1026 = vmatpush1.bf16.msra.mxu1 %v1686_v54  ;;  %1280 = vmatprep.subr.bf16.mxu0 %v1739_v23 }
 0x334   :  { %1027 = vmatprep.subr.bf16.mxu1 %v1691_v55 }
 0x336   :  { %1281 = vmatpush1.bf16.msra.mxu0 %v1737_v24 }
 0x337   :  { %1028 = vmatpush1.bf16.msra.mxu1 %v1689_v56  ;;  %1282 = vmatprep.subr.bf16.mxu0 %v1742_v50  ;;  %v829_v56 = vld [vmem:[%s2152_s15] sm:$0x3] }
 0x338   :  { %1029 = vmatprep.subr.bf16.mxu1 %v1694_v57 }
 0x33a   :  { %1283 = vmatpush1.bf16.msra.mxu0 %v1740_v51 }
 0x33b   :  { %1030 = vmatpush1.bf16.msra.mxu1 %v1692_v58  ;;  %1284 = vmatprep.subr.bf16.mxu0 %v1745_v52 }
 0x33c   :  { %1031 = vmatprep.subr.bf16.mxu1 %v1697_v59 }
 0x33e   :  { %1285 = vmatpush1.bf16.msra.mxu0 %v1743_v53 }
 0x33f   :  { %1032 = vmatpush1.bf16.msra.mxu1 %v1695_v60 }
 0x3d4   :  { %v775_v25 = vpop.f32.mrb[8].mxu0 }
 0x3d5   :  { %v599_v26 = vpop.f32.mrb[8].mxu1  ;;  %v1584_v29 = vpop.f32.mrb[9].mxu0 }
 0x3d6   :  { %v659_v30 = vadd.f32 %v2110_v28, %v599_v26  ;;  %v601_v31 = vpop.f32.mrb[9].mxu1  ;;  %v778_v34 = vpop.f32.mrb[10].mxu0 }
 0x3d7   :  { %v782_v35 = vadd.f32 %v775_v25, %v601_v31  ;;  %v603_v36 = vpop.f32.mrb[10].mxu1  ;;  %v1585_v37 = vpop.f32.mrb[11].mxu0 }
 0x3d8   :  { %v672_v38 = vadd.f32 %v1384_v27, %v659_v30  ;;  %v662_v39 = vadd.f32 %v2112_v32, %v603_v36  ;;  %v605_v40 = vpop.f32.mrb[11].mxu1  ;;  %v831_v32 = vlaneseq }
 0x3d9   :  { %v791_v41 = vadd.f32 %v1393_v33, %v782_v35  ;;  %v783_v42 = vadd.f32 %v778_v34, %v605_v40 }
 0x3da   :  { %v673_v43 = vadd.f32 %v1384_v27, %v662_v39  ;;  %v674_v45 = vmax.f32 %v672_v38, 0.0  ;;  %v832_v54 = vshrl.u32 %v831_v32, 7 }
 0x3db   :  { %v792_v44 = vadd.f32 %v1393_v33, %v783_v42  ;;  %v793_v28 = vmax.f32 %v791_v41, 0.0 }
 0x3dc   :  { %v675_v46 = vmax.f32 %v673_v43, 0.0  ;;  %v833_v55 = vsub.s32 0, %v832_v54  ;;  %v837_v57 = vsub.s32 1, %v832_v54 }
 0x3dd   :  { %v794_v47 = vmax.f32 %v792_v44, 0.0 }
 0x3de   :  { %v795_v48 = vpack.c.bf16 %v675_v46, %v674_v45  ;;  %v834_v58 = vrot.slane %v829_v56, %v833_v55  ;;  %v838_v59 = vrot.slane %v829_v56, %v837_v57  ;;  %v1091_v11 = vrot.slane %v1082_v10, %v837_v57 }
 0x3df   :  { %v796_v49 = vpack.c.bf16 %v794_v47, %v793_v28  ;;  %v1087_v12 = vrot.slane %v1082_v10, %v833_v55 }
 0x3e1   :  { %1033 = vmatprep.mubr.bf16.mxu1 %v796_v49 }
 0x3e2   :  { %1034 = vmatmul.mubr.bf16.vlgmr.msra.gmra.mrb[12].mxu1 %v795_v48 }
 0x4b5   :  { %v1035_v60 = vpop.f32.mrb[12].mxu1 }
 0x4b6   :  { %v1036_v61 = vadd.f32 %v1035_v60, %v834_v58  ;;  %v1037_v62 = vpop.f32.mrb[13].mxu1 }
 0x4b7   :  { %v1038_v63 = vadd.f32 %v1037_v62, %v838_v59  ;;  %v1039_v0 = vpop.f32.mrb[14].mxu1 }
 0x4b8   :  { %v1040_v1 = vadd.f32 %v1039_v0, %v834_v58  ;;  %v1041_v2 = vpop.f32.mrb[15].mxu1  ;;  %v1044_v4 = vmax.f32 %v1036_v61, 0.0 }
 0x4b9   :  { %v1042_v3 = vadd.f32 %v1041_v2, %v838_v59  ;;  %v1045_v6 = vmax.f32 %v1038_v63, 0.0 }
 0x4ba   :  { %v1046_v5 = vmax.f32 %v1040_v1, 0.0 }
 0x4bb   :  { %v1047_v7 = vmax.f32 %v1042_v3, 0.0 }
 0x4bc   :  { %v1048_v8 = vpack.c.bf16 %v1046_v5, %v1044_v4 }
 0x4bd   :  { %v1049_v9 = vpack.c.bf16 %v1047_v7, %v1045_v6 }
 0x4bf   :  { %1286 = vmatprep.mubr.bf16.mxu0 %v1049_v9 }
 0x4c0   :  { %1287 = vmatmul.mubr.bf16.vlgmr.msra.gmra.mrb[12].mxu0 %v1048_v8 }
 0x593   :  { %v1288_v13 = vpop.f32.mrb[12].mxu0 }
 0x594   :  { %v1290_v14 = vpop.f32.mrb[13].mxu0  ;;  %v1289_v17 = vadd.f32 %v1288_v13, %v1087_v12 }
 0x595   :  { %v1291_v15 = vadd.f32 %v1290_v14, %v1091_v11  ;;  %v1292_v16 = vpop.f32.mrb[14].mxu0 }
 0x596   :  { %v1293_v18 = vadd.f32 %v1292_v16, %v1087_v12  ;;  %v1294_v19 = vpop.f32.mrb[15].mxu0 }
 0x597   :  { %v1468_v20 = vpack.c.bf16 %v1291_v15, %v1291_v15  ;;  %v1295_v21 = vadd.f32 %v1294_v19, %v1091_v11 }
 0x598   :  { %v1478_v22 = vpack.c.bf16 %v1293_v18, %v1289_v17 }
 0x599   :  { %1325 = vst.msk [vmem:[%s2157_s20] sm:$0xf] %vm1324_vm4, %v1468_v20  ;;  %v1469_v23 = vpack.c.bf16 %v1295_v21, %v1295_v21 }
 0x59a   :  { %1479 = vst [vmem:[%s2169_s1] sm:$0xff] %v1478_v22  }
 0x59b   :  { %1326 = vst.msk [vmem:[%s2157_s20 + $0x4] sm:$0xf] %vm1324_vm4, %v1469_v23 }
 0x59c   :  { %1339 = vsyncpa [#allocation3], 1 }
 0x59d   :  { %1340 = vsyncpa [#allocation5], 1 }
 0x59e   :  { %1341 = vsyncpa [#allocation8], 1 }

</bundles_post_ra>
